<compile_context>
chip_gen: v6e
topology: v6e:2x2x1
jax: 0.10.0
libtpu: 0.0.40
codegen_flags: <defaults>
</compile_context>

<pallas_src>
import jax
import jax.numpy as jnp
from jax.experimental import pallas as pl
from jax.experimental.pallas import tpu as pltpu

_LANE = 128      # last-dim tiling unit
_SUBLANE = 8     # second-to-last-dim tiling unit


def _round_up(n: int, m: int) -> int:
    return ((n + m - 1) // m) * m


def _pad2(a, shape):
    """Zero-pad a 2-D array up to `shape`."""
    pads = [(0, s - d) for d, s in zip(a.shape, shape)]
    if all(p == (0, 0) for p in pads):
        return a
    return jnp.pad(a, pads)


def _qnet_kernel(x_ref, w1_ref, b1_ref, w2_ref, b2_ref, o_ref):
    # hidden = relu(x @ W1 + b1).  x keeps its true (narrow) width; the MXU
    # contraction over In is zero-padded in vregs by the compiler.  The
    # hidden/output widths are lane-dense because the weights are padded.
    h = jnp.dot(x_ref[...], w1_ref[...], preferred_element_type=jnp.float32)
    h = jnp.maximum(h + b1_ref[...], 0.0)                               # (tm, Hp)
    y = jnp.dot(h, w2_ref[...], preferred_element_type=jnp.float32)    # (tm, Op)
    # Slice back to the true output width, add bias, narrow (masked) store.
    o = y[:, : o_ref.shape[1]] + b2_ref[...]                           # (tm, O)
    o_ref[...] = o.astype(o_ref.dtype)


def linear_qnet_forward(x, w1, b1, w2, b2, *, block_batch=1024):
    """Forward pass of Linear_QNet.

    x:  (B, In)     w1: (In, H)  b1: (1, H)
    w2: (H, O)      b2: (1, O)   ->  (B, O)
    Weights are stored pre-transposed ((in, out)) vs. PyTorch's (out, in).
    """
    B, In = x.shape
    H = w1.shape[1]
    O = w2.shape[1]
    dt = x.dtype

    # Lane-pad only the tiny weights/biases (one-time, grid-constant).
    # Activations stay narrow in HBM.
    H_p = _round_up(H, _LANE)
    O_p = _round_up(O, _LANE)
    w1_p = _pad2(w1, (In, H_p))
    b1_p = _pad2(b1, (1, H_p))
    w2_p = _pad2(w2, (H_p, O_p))
    # b2 stays (1, O); it is added after the in-kernel slice back to O.

    out_shape = jax.ShapeDtypeStruct((B, O), dt)

    if B <= block_batch:
        # Grid-less single invocation: everything resident in VMEM, no
        # pipelining machinery / per-step overhead.
        return pl.pallas_call(_qnet_kernel, out_shape=out_shape)(
            x, w1_p, b1_p, w2_p, b2
        )

    # Batch-tiled path for large batches.
    # tm: multiple of 8, capped at block_batch, and chosen so the grid has
    # >= 2 steps (both TensorCores on v7x via the "parallel" axis).
    tm = min(block_batch, _round_up(pl.cdiv(B, 2), _SUBLANE))
    grid = (pl.cdiv(B, tm),)   # last tile may be partial -> masked writes

    flops = 2 * B * (In * H_p + H_p * O_p)
    bytes_accessed = (
        x.size + w1_p.size + b1_p.size + w2_p.size + b2.size + B * O
    ) * jnp.dtype(dt).itemsize

    return pl.pallas_call(
        _qnet_kernel,
        out_shape=out_shape,
        grid=grid,
        in_specs=[
            # x tile marches over the batch; pipelined/double-buffered.
            pl.BlockSpec((tm, In), lambda i: (i, 0)),
            # Weights/biases: constant block index -> fetched once, VMEM-resident.
            pl.BlockSpec((In, H_p), lambda i: (0, 0)),
            pl.BlockSpec((1, H_p), lambda i: (0, 0)),
            pl.BlockSpec((H_p, O_p), lambda i: (0, 0)),
            pl.BlockSpec((1, O), lambda i: (0, 0)),
        ],
        out_specs=pl.BlockSpec((tm, O), lambda i: (i, 0)),
        compiler_params=pltpu.CompilerParams(
            # Batch tiles are independent -> shard across cores (v7x 2 TCs).
            dimension_semantics=("parallel",),
        ),
        cost_estimate=pl.CostEstimate(
            flops=flops, transcendentals=0, bytes_accessed=bytes_accessed
        ),
    )(x, w1_p, b1_p, w2_p, b2)


def init_params(key, input_size, hidden_size, output_size, dtype=jnp.float32):
    """Deterministic init matching nn.Linear's U(-1/sqrt(fan_in), 1/sqrt(fan_in))."""
    k1, k2, k3, k4 = jax.random.split(key, 4)
    lim1 = 1.0 / jnp.sqrt(jnp.asarray(input_size, dtype))
    lim2 = 1.0 / jnp.sqrt(jnp.asarray(hidden_size, dtype))
    # Stored as (in, out) = transpose of PyTorch's (out, in) weight layout.
    w1 = jax.random.uniform(k1, (input_size, hidden_size), dtype, -lim1, lim1)
    b1 = jax.random.uniform(k2, (1, hidden_size), dtype, -lim1, lim1)
    w2 = jax.random.uniform(k3, (hidden_size, output_size), dtype, -lim2, lim2)
    b2 = jax.random.uniform(k4, (1, output_size), dtype, -lim2, lim2)
    return w1, b1, w2, b2


# TODO(synk): Linear_QNet.save() (torch.save checkpointing) is host-side I/O
# and has no Pallas equivalent; only the forward pass is implemented.

if __name__ == "__main__":
    # Small shapes consistent with the module (Snake Q-net style): 11 -> 32 -> 3
    batch, input_size, hidden_size, output_size = 2, 11, 32, 3

    key = jax.random.PRNGKey(0)
    kx, kp = jax.random.split(key)
    x = jax.random.normal(kx, (batch, input_size), jnp.float32)
    w1, b1, w2, b2 = init_params(kp, input_size, hidden_size, output_size)

    # Small-batch (grid-less) path.
    out = jax.block_until_ready(linear_qnet_forward(x, w1, b1, w2, b2))
    ref = jnp.maximum(x @ w1 + b1, 0.0) @ w2 + b2
    assert out.shape == (batch, output_size)
    assert jnp.allclose(out, ref, atol=1e-5, rtol=1e-5)

    # Batch-tiled path: grid > 1 with a partial final tile (masked writes).
    big_B = 1030
    xb = jax.random.normal(jax.random.PRNGKey(1), (big_B, input_size), jnp.float32)
    out_b = jax.block_until_ready(linear_qnet_forward(xb, w1, b1, w2, b2))
    ref_b = jnp.maximum(xb @ w1 + b1, 0.0) @ w2 + b2
    assert out_b.shape == (big_B, output_size)
    assert jnp.allclose(out_b, ref_b, atol=1e-4, rtol=1e-4)

    print("KERNEL_OK")
</pallas_src>

<mosaic_0001>
module attributes {stable_mosaic.version = 11 : i64} {
  func.func @_qnet_kernel(%arg0: memref<2x11xf32, #tpu.memory_space<vmem>>, %arg1: memref<11x128xf32, #tpu.memory_space<vmem>>, %arg2: memref<1x128xf32, #tpu.memory_space<vmem>>, %arg3: memref<128x128xf32, #tpu.memory_space<vmem>>, %arg4: memref<1x3xf32, #tpu.memory_space<vmem>>, %arg5: memref<2x3xf32, #tpu.memory_space<vmem>>) attributes {dimension_semantics = [], scalar_prefetch = 0 : i64, scratch_operands = 0 : i64, tpu.core_type = #tpu.core_type<tc>} {
    %c0 = arith.constant 0 : index
    %c0_0 = arith.constant 0 : index
    %0 = vector.load %arg0[%c0, %c0_0] : memref<2x11xf32, #tpu.memory_space<vmem>>, vector<2x11xf32>
    %c0_1 = arith.constant 0 : index
    %c0_2 = arith.constant 0 : index
    %1 = vector.load %arg1[%c0_1, %c0_2] : memref<11x128xf32, #tpu.memory_space<vmem>>, vector<11x128xf32>
    %cst = arith.constant dense<0.000000e+00> : vector<2x128xf32>
    %2 = tpu.matmul %0, %1, %cst {dimension_numbers = #tpu.dot_dimension_numbers<[1], [0], [0], [1], [0, 0, 1, 1], [], []>} : vector<2x11xf32>, vector<11x128xf32>, vector<2x128xf32> -> vector<2x128xf32>
    %c0_3 = arith.constant 0 : index
    %c0_4 = arith.constant 0 : index
    %3 = vector.load %arg2[%c0_3, %c0_4] : memref<1x128xf32, #tpu.memory_space<vmem>>, vector<1x128xf32>
    %4 = vector.broadcast %3 : vector<1x128xf32> to vector<2x128xf32>
    %5 = arith.addf %2, %4 : vector<2x128xf32>
    %cst_5 = arith.constant 0.000000e+00 : f32
    %6 = vector.broadcast %cst_5 : f32 to vector<2x128xf32>
    %7 = arith.maximumf %5, %6 : vector<2x128xf32>
    %c0_6 = arith.constant 0 : index
    %c0_7 = arith.constant 0 : index
    %8 = vector.load %arg3[%c0_6, %c0_7] : memref<128x128xf32, #tpu.memory_space<vmem>>, vector<128x128xf32>
    %cst_8 = arith.constant dense<0.000000e+00> : vector<2x128xf32>
    %9 = tpu.matmul %7, %8, %cst_8 {dimension_numbers = #tpu.dot_dimension_numbers<[1], [0], [0], [1], [0, 0, 1, 1], [], []>} : vector<2x128xf32>, vector<128x128xf32>, vector<2x128xf32> -> vector<2x128xf32>
    %10 = vector.extract_strided_slice %9 {offsets = [0, 0], sizes = [2, 3], strides = [1, 1]} : vector<2x128xf32> to vector<2x3xf32>
    %c0_9 = arith.constant 0 : index
    %c0_10 = arith.constant 0 : index
    %11 = vector.load %arg4[%c0_9, %c0_10] : memref<1x3xf32, #tpu.memory_space<vmem>>, vector<1x3xf32>
    %12 = vector.broadcast %11 : vector<1x3xf32> to vector<2x3xf32>
    %13 = arith.addf %10, %12 : vector<2x3xf32>
    %c0_11 = arith.constant 0 : index
    %c0_12 = arith.constant 0 : index
    %14 = vector.load %arg5[%c0_11, %c0_12] : memref<2x3xf32, #tpu.memory_space<vmem>>, vector<2x3xf32>
    tpu.vector_store %arg5[%c0_11, %c0_12], %13 {strides = array<i32>} : memref<2x3xf32, #tpu.memory_space<vmem>>, vector<2x3xf32>,
    return
  }
}

</mosaic_0001>

<bundles_post_ra>
// kernel: tpu_custom_call.1
= control target key start
LH: loop header
LB: loop body
LE: loop exit
PB: predicated region body
PF: predicated region fallthrough
CT: control target
= control target key end

     0   :  { %10 = vsyncpa [#allocation3], 0  ;;  %s477_s0 = inlined_call_operand.hbm [shape: f32[2,11], index: 0, kind: input, shape index: {}]   ;;  %s478_s1 = inlined_call_operand.hbm [shape: f32[11,128], index: 1, kind: input, shape index: {}]   ;;  %s479_s2 = inlined_call_operand.vmem [shape: f32[1,128], index: 2, kind: input, shape index: {}]   ;;  %s480_s3 = inlined_call_operand.hbm [shape: f32[128,128], index: 3, kind: input, shape index: {}]   ;;  %s481_s4 = inlined_call_operand.vmem [shape: f32[1,3], index: 4, kind: input, shape index: {}]   ;;  %s482_s5 = inlined_call_operand.hbm [shape: f32[2,3], index: 5, kind: output, shape index: {}]  }
   0x1   :  { %11 = vsyncpa [#allocation6], 0 }
   0x2   :  { %12 = vsyncpa [#allocation4], 0  ;;  %s421_s18 = smov [#allocation5]  }
   0x3   :  { %s28_s19 = sshll.u32 %s421_s18, 4  ;;  %s29_s19 = int_to_ptr.vmem [resolvable:$true] %s28_s19 }
   0x4   :  { %s343_s20 = scalar_lea.vmem %s29_s19, 256  ;;  %p348_p1 = scmp.lt.s32.totalorder %s29_s19, %s29_s19 }
   0x5   :  { %p344_p0 = scmp.ne.s32.totalorder %s29_s19, %s343_s20  ;;  %p349_p2 = scmp.lt.s32.totalorder %s343_s20, %s343_s20 }
   0x7   :  { %p350_p3 = por %p349_p2, %p348_p1 }
   0x9   :  { %p351_p4 = pnand %p350_p3, %p344_p0 }
   0xb   :  { %354 = shalt.err (!%p351_p4)
}
   0xc   :  { %s422_s21 = smov 128   ;;  %s423_s22 = smov 8  }
   0xd   :  { %34 = dma.hbm_to_vmem [thread:$0]  %s478_s1, 256, %s29_s19, [#allocation6], %s422_s21, %s422_s21, %s423_s22  }
   0xe   :  { %s424_s25 = smov [#allocation2]   ;;  %s425_s27 = smov [#allocation7]  }
   0xf   :  { %s19_s26 = sshll.u32 %s424_s25, 4  ;;  %s42_s28 = sshll.u32 %s425_s27, 4  ;;  %s20_s26 = int_to_ptr.vmem [resolvable:$true] %s19_s26  ;;  %s43_s28 = int_to_ptr.vmem [resolvable:$true] %s42_s28 }
  0x10   :  { %s363_s29 = scalar_lea.vmem %s20_s26, 32  ;;  %p368_p6 = scmp.lt.s32.totalorder %s20_s26, %s20_s26 }
  0x11   :  { %p364_p5 = scmp.ne.s32.totalorder %s20_s26, %s363_s29  ;;  %p369_p7 = scmp.lt.s32.totalorder %s363_s29, %s363_s29 }
  0x13   :  { %p370_p8 = por %p369_p7, %p368_p6 }
  0x15   :  { %p371_p9 = pnand %p370_p8, %p364_p5 }
  0x17   :  { %374 = shalt.err (!%p371_p9)
}
  0x18   :  { %22 = dma.hbm_to_vmem [thread:$0]  %s477_s0, 32, %s20_s26, [#allocation3]  }
  0x19   :  { %s383_s7 = scalar_lea.vmem %s43_s28, 2048  ;;  %p388_p11 = scmp.lt.s32.totalorder %s43_s28, %s43_s28 }
  0x1a   :  { %p384_p10 = scmp.ne.s32.totalorder %s43_s28, %s383_s7  ;;  %p389_p12 = scmp.lt.s32.totalorder %s383_s7, %s383_s7 }
  0x1c   :  { %p390_p13 = por %p389_p12, %p388_p11 }
  0x1e   :  { %p391_p0 = pnand %p390_p13, %p384_p10 }
  0x20   :  { %394 = shalt.err (!%p391_p0)
}
  0x21   :  { %48 = dma.hbm_to_vmem [thread:$0]  %s480_s3, 2048, %s43_s28, [#allocation6], %s422_s21, %s422_s21, %s423_s22  }
  0x22   :  { %415 = dma.done.wait [#allocation3], 32  }
  0x23   :  { %416 = vsyncadd [#allocation3], 4294967264 }
  0x24   :  { %417 = dma.done.wait [#allocation6], 2304  }
  0x25   :  { %418 = vsyncadd [#allocation6], 4294964992  ;;  %v426_v0 = vmov 0.0   ;;  %vm427_vm0 = vmmov 0   ;;  %vm74_vm1 = vcmask 1042432   ;;  %v61_v2 = vld [vmem:[#allocation5] sm:$0xff] }
  0x26   :  { %285 = vmatprep.subr.mxu0 %v426_v0  ;;  %289 = vmatprep.mubr.msk.f32.mxu0 %vm427_vm0, %v426_v0  ;;  %v62_v1 = vld [vmem:[#allocation5 + $0x8] sm:$0x7]  ;;  %v60_v3 = vld [vmem:[#allocation2] sm:$0x3]  ;;  %vm70_vm2 = vcmask 89088   ;;  %v163_v5 = vld [vmem:[#allocation7 + $0x70] sm:$0xff] }
  0x27   :  { %292 = vmatprep.subr.mxu1 %v426_v0  ;;  %324 = vmatprep.mubr.msk.f32.mxu1 %vm427_vm0, %v426_v0  ;;  %v164_v4 = vld [vmem:[#allocation7 + $0x78] sm:$0xff]  ;;  %v162_v6 = vld [vmem:[#allocation7 + $0x68] sm:$0xff]  ;;  %v161_v7 = vld [vmem:[#allocation7 + $0x60] sm:$0xff]  ;;  %s428_s11 = smov [#allocation8]   ;;  %vm243_vm3 = vcmask 17408  }
  0x28   :  { %286 = vmatpush3.msk.msra.mxu0 %vm74_vm1, %v62_v1  ;;  %293 = vmatpush3.msra.mxu1 %v164_v4  ;;  %v160_v8 = vld [vmem:[#allocation7 + $0x58] sm:$0xff]  ;;  %v159_v9 = vld [vmem:[#allocation7 + $0x50] sm:$0xff]  ;;  %v158_v10 = vld [vmem:[#allocation7 + $0x48] sm:$0xff]  ;;  %s251_s12 = sshll.u32 %s428_s11, 4  ;;  %s252_s12 = int_to_ptr.vmem [resolvable:$true] %s251_s12 }
  0x29   :  { %287 = vmatprep.subr.mxu0 %v426_v0  ;;  %294 = vmatprep.subr.mxu1 %v426_v0  ;;  %v157_v11 = vld [vmem:[#allocation7 + $0x40] sm:$0xff]  ;;  %v156_v12 = vld [vmem:[#allocation7 + $0x38] sm:$0xff]  ;;  %v155_v13 = vld [vmem:[#allocation7 + $0x30] sm:$0xff]  ;;  %s395_s13 = scalar_lea.vmem %s252_s12, 32  ;;  %p400_p2 = scmp.lt.s32.totalorder %s252_s12, %s252_s12 }
  0x2a   :  { %288 = vmatpush3.msra.mxu0 %v61_v2  ;;  %295 = vmatpush3.msra.mxu1 %v163_v5  ;;  %v154_v14 = vld [vmem:[#allocation7 + $0x28] sm:$0xff]  ;;  %v153_v15 = vld [vmem:[#allocation7 + $0x20] sm:$0xff]  ;;  %v152_v16 = vld [vmem:[#allocation7 + $0x18] sm:$0xff]  ;;  %p396_p1 = scmp.ne.s32.totalorder %s252_s12, %s395_s13  ;;  %p401_p3 = scmp.lt.s32.totalorder %s395_s13, %s395_s13 }
  0x2b   :  { %290 = vmatmul.mubr.msk.f32.vlgmr.msra.gmra.mxu0 %vm70_vm2, %v60_v3  ;;  %296 = vmatprep.subr.mxu1 %v426_v0  ;;  %v151_v17 = vld [vmem:[#allocation7 + $0x10] sm:$0xff]  ;;  %v150_v18 = vld [vmem:[#allocation7 + $0x8] sm:$0xff]  ;;  %v149_v19 = vld [vmem:[#allocation7] sm:$0xff] }
  0x2c   :  { %297 = vmatpush3.msra.mxu1 %v162_v6  ;;  %v261_v20 = vld [vmem:[%s479_s2] ss:$0 sm:$0xff]  ;;  %p402_p4 = por %p401_p3, %p400_p2 }
  0x2d   :  { %298 = vmatprep.subr.mxu1 %v426_v0  ;;  %v264_v25 = vld [vmem:[%s481_s4] ss:$0 sm:$0xff] }
  0x2e   :  { %299 = vmatpush3.msra.mxu1 %v161_v7  ;;  %p403_p5 = pnand %p402_p4, %p396_p1 }
  0x2f   :  { %300 = vmatprep.subr.mxu1 %v426_v0 }
  0x30   :  { %301 = vmatpush3.msra.mxu1 %v160_v8 }
  0x31   :  { %302 = vmatprep.subr.mxu1 %v426_v0 }
  0x32   :  { %303 = vmatpush3.msra.mxu1 %v159_v9 }
  0x33   :  { %304 = vmatprep.subr.mxu1 %v426_v0 }
  0x34   :  { %305 = vmatpush3.msra.mxu1 %v158_v10 }
  0x35   :  { %306 = vmatprep.subr.mxu1 %v426_v0 }
  0x36   :  { %307 = vmatpush3.msra.mxu1 %v157_v11 }
  0x37   :  { %308 = vmatprep.subr.mxu1 %v426_v0 }
  0x38   :  { %309 = vmatpush3.msra.mxu1 %v156_v12 }
  0x39   :  { %310 = vmatprep.subr.mxu1 %v426_v0 }
  0x3a   :  { %311 = vmatpush3.msra.mxu1 %v155_v13 }
  0x3b   :  { %312 = vmatprep.subr.mxu1 %v426_v0 }
  0x3c   :  { %313 = vmatpush3.msra.mxu1 %v154_v14 }
  0x3d   :  { %314 = vmatprep.subr.mxu1 %v426_v0 }
  0x3e   :  { %315 = vmatpush3.msra.mxu1 %v153_v15 }
  0x3f   :  { %316 = vmatprep.subr.mxu1 %v426_v0 }
  0x40   :  { %317 = vmatpush3.msra.mxu1 %v152_v16 }
  0x41   :  { %318 = vmatprep.subr.mxu1 %v426_v0 }
  0x42   :  { %319 = vmatpush3.msra.mxu1 %v151_v17 }
  0x43   :  { %320 = vmatprep.subr.mxu1 %v426_v0 }
  0x44   :  { %321 = vmatpush3.msra.mxu1 %v150_v18 }
  0x45   :  { %322 = vmatprep.subr.mxu1 %v426_v0 }
  0x46   :  { %323 = vmatpush3.msra.mxu1 %v149_v19 }
  0xeb   :  { %v144_v21 = vpop.f32.mrf.mxu0 }
  0xec   :  { %v145_v22 = vadd.f32 %v261_v20, %v144_v21 }
  0xed   :  { %v291_v23 = vpop.f32.mrf.mxu0 }
  0xee   :  { %v148_v24 = vmax.f32 %v145_v22, 0.0 }
  0xf0   :  { %325 = vmatmul.mubr.f32.vlgmr.msra.gmra.mxu1 %v148_v24 }
 0x1b0   :  { %v231_v26 = vpop.f32.mrf.mxu1 }
 0x1b1   :  { %v242_v27 = vadd.f32 %v264_v25, %v231_v26 }
 0x1b2   :  { %v326_v28 = vpop.f32.mrf.mxu1 }
 0x1b3   :  { %244 = vst.msk [vmem:[#allocation8] sm:$0x3] %vm243_vm3, %v242_v27 }
 0x1b4   :  { %406 = shalt.err (!%p403_p5)
}
 0x1b5   :  { %254 = dma.vmem_to_hbm [thread:$0]  %s252_s12, 32, %s482_s5, [#allocation4]  }
 0x1b6   :  { %419 = dma.done.wait [#allocation4], 32  }
 0x1b7   :  { %420 = vsyncadd [#allocation4], 4294967264 }
 0x1b8   :  { %258 = vsyncpa [#allocation3], 1 }
 0x1b9   :  { %259 = vsyncpa [#allocation6], 1 }
 0x1ba   :  { %260 = vsyncpa [#allocation4], 1 }

</bundles_post_ra>
